<compile_context>
chip_gen: v6e
topology: v6e:2x2x1
jax: 0.10.0
libtpu: 0.0.40
codegen_flags: <defaults>
</compile_context>

<pallas_src>
import math

import jax
import jax.numpy as jnp
from jax import lax
from jax.experimental import pallas as pl
from jax.experimental.pallas import tpu as pltpu


def _self_attention_kernel(d_out):
    scale = 1.0 / math.sqrt(d_out)  # keys.shape[-1] ** 0.5 in the PyTorch module

    def kernel(x_ref, wq_ref, wk_ref, wv_ref, o_ref):
        x = x_ref[0]                                              # (T, d_in) bf16

        # Three lane-aligned projection matmuls on the MXU (bf16 in, f32 acc).
        q = jnp.dot(x, wq_ref[...], preferred_element_type=jnp.float32)
        k = jnp.dot(x, wk_ref[...], preferred_element_type=jnp.float32)
        v = jnp.dot(x, wv_ref[...], preferred_element_type=jnp.float32)

        # Fold the softmax temperature into q (cheaper than scaling (T,T)
        # scores), then feed the MXU bf16 operands again.  The contraction runs
        # over the last axis of BOTH q and k, so no k.T is materialised.
        q = (q * scale).astype(jnp.bfloat16)
        k = k.astype(jnp.bfloat16)
        s = lax.dot_general(q, k, (((1,), (1,)), ((), ())),
                            preferred_element_type=jnp.float32)   # (T, T)

        # Numerically stable softmax in f32.  Exact divide (the approx EUP
        # reciprocal caused the previous accuracy failure); no causal mask in
        # SelfAttention_v1.
        m = jnp.max(s, axis=-1, keepdims=True)
        e = jnp.exp(s - m)
        w = e / jnp.sum(e, axis=-1, keepdims=True)

        # PV matmul: bf16 operands, f32 accumulation.
        ctx = jnp.dot(w.astype(jnp.bfloat16), v.astype(jnp.bfloat16),
                      preferred_element_type=jnp.float32)         # (T, d_out)
        o_ref[0] = ctx.astype(o_ref.dtype)

    return kernel


def self_attention_v1(x, w_query, w_key, w_value):
    """SelfAttention_v1 forward.

    x: (T, d_in) or (B, T, d_in);  W_*: (d_in, d_out).
    Returns (T, d_out) / (B, T, d_out) in float32.
    """
    squeeze = (x.ndim == 2)
    if squeeze:
        x = x[None]
    B, T, d_in = x.shape
    d_out = w_query.shape[1]

    # bf16 operands for the MXU + half the HBM->VMEM DMA bytes; accumulation
    # stays f32 inside the kernel.  (In a real module the weight casts would be
    # hoisted to parameter-init time, analogous to the old concat hoist.)
    xb = x.astype(jnp.bfloat16)
    wq = w_query.astype(jnp.bfloat16)
    wk = w_key.astype(jnp.bfloat16)
    wv = w_value.astype(jnp.bfloat16)

    out = pl.pallas_call(
        _self_attention_kernel(d_out),
        out_shape=jax.ShapeDtypeStruct((B, T, d_out), jnp.float32),
        grid=(B,),
        in_specs=[
            pl.BlockSpec((1, T, d_in), lambda b: (b, 0, 0)),      # x[b]
            pl.BlockSpec((d_in, d_out), lambda b: (0, 0)),        # W_query
            pl.BlockSpec((d_in, d_out), lambda b: (0, 0)),        # W_key
            pl.BlockSpec((d_in, d_out), lambda b: (0, 0)),        # W_value
        ],
        out_specs=pl.BlockSpec((1, T, d_out), lambda b: (b, 0, 0)),
        compiler_params=pltpu.CompilerParams(
            dimension_semantics=("parallel",)),                   # 2x on v7x
    )(xb, wq, wk, wv)

    return out[0] if squeeze else out


def reference_self_attention_v1(x, w_query, w_key, w_value):
    """Pure-JAX (f32) mirror of the PyTorch forward; works batched or not."""
    keys = x @ w_key
    queries = x @ w_query
    values = x @ w_value
    attn_scores = queries @ keys.swapaxes(-1, -2)
    attn_weights = jax.nn.softmax(attn_scores / math.sqrt(keys.shape[-1]), axis=-1)
    return attn_weights @ values


if __name__ == "__main__":
    # Small deterministic shapes consistent with the module: (batch, seq, hidden).
    B, T, d_in, d_out = 4, 8, 32, 32

    key = jax.random.PRNGKey(0)
    kx, kq, kk, kv = jax.random.split(key, 4)

    # Keep activations / attention scores O(1) (like the book's toy inputs) so
    # the bf16-kernel vs f32-reference comparison below is meaningful.
    x = jax.random.normal(kx, (B, T, d_in), dtype=jnp.float32) * (d_in ** -0.5)
    # torch.rand-style init (uniform [0,1)) for the three parameter matrices.
    w_query = jax.random.uniform(kq, (d_in, d_out), dtype=jnp.float32)
    w_key = jax.random.uniform(kk, (d_in, d_out), dtype=jnp.float32)
    w_value = jax.random.uniform(kv, (d_in, d_out), dtype=jnp.float32)

    out = self_attention_v1(x, w_query, w_key, w_value)
    out = jax.block_until_ready(out)

    ref = reference_self_attention_v1(x, w_query, w_key, w_value)
    assert out.shape == (B, T, d_out), out.shape
    # bf16 MXU inputs (per the perf review) add ~1e-2 relative error vs the
    # pure-f32 reference; the softmax itself is exact f32.
    max_err = float(jnp.max(jnp.abs(out - ref)))
    assert jnp.allclose(out, ref, atol=5e-2, rtol=5e-2), max_err

    print("KERNEL_OK")
</pallas_src>

<mosaic_0001>
module attributes {stable_mosaic.version = 11 : i64} {
  func.func @kernel(%arg0: i32, %arg1: memref<1x8x32xbf16, #tpu.memory_space<vmem>>, %arg2: memref<32x32xbf16, #tpu.memory_space<vmem>>, %arg3: memref<32x32xbf16, #tpu.memory_space<vmem>>, %arg4: memref<32x32xbf16, #tpu.memory_space<vmem>>, %arg5: memref<1x8x32xf32, #tpu.memory_space<vmem>>) attributes {dimension_semantics = [#tpu.dimension_semantics<parallel>], iteration_bounds = array<i64: 4>, scalar_prefetch = 0 : i64, scratch_operands = 0 : i64, tpu.core_type = #tpu.core_type<tc>, window_params = [{transform_indices = @transform_0, window_bounds = array<i64: 1, 8, 32>}, {pipeline_mode = #tpu.pipeline_mode<synchronous>, transform_indices = @transform_1, window_bounds = array<i64: 32, 32>}, {pipeline_mode = #tpu.pipeline_mode<synchronous>, transform_indices = @transform_2, window_bounds = array<i64: 32, 32>}, {pipeline_mode = #tpu.pipeline_mode<synchronous>, transform_indices = @transform_3, window_bounds = array<i64: 32, 32>}, {transform_indices = @transform_4, window_bounds = array<i64: 1, 8, 32>}]} {
    %c0 = arith.constant 0 : index
    %c0_0 = arith.constant 0 : index
    %c0_1 = arith.constant 0 : index
    %0 = vector.load %arg1[%c0, %c0_0, %c0_1] : memref<1x8x32xbf16, #tpu.memory_space<vmem>>, vector<1x8x32xbf16>
    %1 = vector.shape_cast %0 : vector<1x8x32xbf16> to vector<8x32xbf16>
    %c0_2 = arith.constant 0 : index
    %c0_3 = arith.constant 0 : index
    %2 = vector.load %arg2[%c0_2, %c0_3] : memref<32x32xbf16, #tpu.memory_space<vmem>>, vector<32x32xbf16>
    %cst = arith.constant dense<0.000000e+00> : vector<8x32xf32>
    %3 = tpu.matmul %1, %2, %cst {dimension_numbers = #tpu.dot_dimension_numbers<[1], [0], [0], [1], [0, 0, 1, 1], [], []>} : vector<8x32xbf16>, vector<32x32xbf16>, vector<8x32xf32> -> vector<8x32xf32>
    %c0_4 = arith.constant 0 : index
    %c0_5 = arith.constant 0 : index
    %4 = vector.load %arg3[%c0_4, %c0_5] : memref<32x32xbf16, #tpu.memory_space<vmem>>, vector<32x32xbf16>
    %cst_6 = arith.constant dense<0.000000e+00> : vector<8x32xf32>
    %5 = tpu.matmul %1, %4, %cst_6 {dimension_numbers = #tpu.dot_dimension_numbers<[1], [0], [0], [1], [0, 0, 1, 1], [], []>} : vector<8x32xbf16>, vector<32x32xbf16>, vector<8x32xf32> -> vector<8x32xf32>
    %c0_7 = arith.constant 0 : index
    %c0_8 = arith.constant 0 : index
    %6 = vector.load %arg4[%c0_7, %c0_8] : memref<32x32xbf16, #tpu.memory_space<vmem>>, vector<32x32xbf16>
    %cst_9 = arith.constant dense<0.000000e+00> : vector<8x32xf32>
    %7 = tpu.matmul %1, %6, %cst_9 {dimension_numbers = #tpu.dot_dimension_numbers<[1], [0], [0], [1], [0, 0, 1, 1], [], []>} : vector<8x32xbf16>, vector<32x32xbf16>, vector<8x32xf32> -> vector<8x32xf32>
    %cst_10 = arith.constant 0.176776692 : f32
    %8 = vector.broadcast %cst_10 : f32 to vector<8x32xf32>
    %9 = arith.mulf %3, %8 : vector<8x32xf32>
    %10 = arith.truncf %9 : vector<8x32xf32> to vector<8x32xbf16>
    %11 = arith.truncf %5 : vector<8x32xf32> to vector<8x32xbf16>
    %cst_11 = arith.constant dense<0.000000e+00> : vector<8x8xf32>
    %12 = tpu.matmul %10, %11, %cst_11 {dimension_numbers = #tpu.dot_dimension_numbers<[1], [1], [0], [0], [0, 0, 1, 0], [], []>} : vector<8x32xbf16>, vector<8x32xbf16>, vector<8x8xf32> -> vector<8x8xf32>
    %cst_12 = arith.constant dense<0xFF800000> : vector<8xf32>
    %13 = vector.multi_reduction <maximumf>, %12, %cst_12 [1] : vector<8x8xf32> to vector<8xf32>
    %14 = vector.shape_cast %13 : vector<8xf32> to vector<8x1xf32>
    %15 = vector.broadcast %14 : vector<8x1xf32> to vector<8x8xf32>
    %16 = arith.subf %12, %15 : vector<8x8xf32>
    %17 = math.exp %16 : vector<8x8xf32>
    %cst_13 = arith.constant dense<0.000000e+00> : vector<8xf32>
    %18 = vector.multi_reduction <add>, %17, %cst_13 [1] : vector<8x8xf32> to vector<8xf32>
    %19 = vector.shape_cast %18 : vector<8xf32> to vector<8x1xf32>
    %20 = vector.broadcast %19 : vector<8x1xf32> to vector<8x8xf32>
    %21 = arith.divf %17, %20 : vector<8x8xf32>
    %22 = arith.truncf %21 : vector<8x8xf32> to vector<8x8xbf16>
    %23 = arith.truncf %7 : vector<8x32xf32> to vector<8x32xbf16>
    %cst_14 = arith.constant dense<0.000000e+00> : vector<8x32xf32>
    %24 = tpu.matmul %22, %23, %cst_14 {dimension_numbers = #tpu.dot_dimension_numbers<[1], [0], [0], [1], [0, 0, 1, 1], [], []>} : vector<8x8xbf16>, vector<8x32xbf16>, vector<8x32xf32> -> vector<8x32xf32>
    %c0_15 = arith.constant 0 : index
    %c0_16 = arith.constant 0 : index
    %c0_17 = arith.constant 0 : index
    %25 = vector.load %arg5[%c0_15, %c0_16, %c0_17] : memref<1x8x32xf32, #tpu.memory_space<vmem>>, vector<1x8x32xf32>
    %26 = vector.shape_cast %25 : vector<1x8x32xf32> to vector<8x32xf32>
    %27 = vector.shape_cast %24 : vector<8x32xf32> to vector<1x8x32xf32>
    tpu.vector_store %arg5[%c0_15, %c0_16, %c0_17], %27 {strides = array<i32>} : memref<1x8x32xf32, #tpu.memory_space<vmem>>, vector<1x8x32xf32>,
    return
  }
  func.func @transform_0(%arg0: i32) -> (i32, i32, i32) {
    %c0_i32 = arith.constant 0 : i32
    %c0_i32_0 = arith.constant 0 : i32
    %c0_i32_1 = arith.constant 0 : i32
    return %arg0, %c0_i32, %c0_i32_0 : i32, i32, i32
  }
  func.func @transform_1(%arg0: i32) -> (i32, i32) {
    %c0_i32 = arith.constant 0 : i32
    %c0_i32_0 = arith.constant 0 : i32
    %c0_i32_1 = arith.constant 0 : i32
    return %c0_i32, %c0_i32_0 : i32, i32
  }
  func.func @transform_2(%arg0: i32) -> (i32, i32) {
    %c0_i32 = arith.constant 0 : i32
    %c0_i32_0 = arith.constant 0 : i32
    %c0_i32_1 = arith.constant 0 : i32
    return %c0_i32, %c0_i32_0 : i32, i32
  }
  func.func @transform_3(%arg0: i32) -> (i32, i32) {
    %c0_i32 = arith.constant 0 : i32
    %c0_i32_0 = arith.constant 0 : i32
    %c0_i32_1 = arith.constant 0 : i32
    return %c0_i32, %c0_i32_0 : i32, i32
  }
  func.func @transform_4(%arg0: i32) -> (i32, i32, i32) {
    %c0_i32 = arith.constant 0 : i32
    %c0_i32_0 = arith.constant 0 : i32
    %c0_i32_1 = arith.constant 0 : i32
    return %arg0, %c0_i32, %c0_i32_0 : i32, i32, i32
  }
}

</mosaic_0001>

<bundles_post_ra>
// kernel: tpu_custom_call.1
= control target key start
LH: loop header
LB: loop body
LE: loop exit
PB: predicated region body
PF: predicated region fallthrough
CT: control target
= control target key end

     0   :  { %9 = vsyncpa [#allocation3], 0  ;;  %s1240_s0 = inlined_call_operand.hbm [shape: bf16[4,8,32], index: 0, kind: input, shape index: {}]   ;;  %s1241_s1 = inlined_call_operand.hbm [shape: bf16[32,32], index: 1, kind: input, shape index: {}]   ;;  %s1242_s2 = inlined_call_operand.hbm [shape: bf16[32,32], index: 2, kind: input, shape index: {}]   ;;  %s1243_s3 = inlined_call_operand.hbm [shape: bf16[32,32], index: 3, kind: input, shape index: {}]   ;;  %s1244_s4 = inlined_call_operand.hbm [shape: f32[4,8,32], index: 4, kind: output, shape index: {}]  }
   0x1   :  { %11 = vsyncpa [#allocation3 + $0x1], 0 }
   0x2   :  { %12 = vsyncpa [#allocation6], 0 }
   0x3   :  { %13 = vsyncpa [#allocation9], 0 }
   0x4   :  { %14 = vsyncpa [#allocation4], 0 }
   0x5   :  { %16 = vsyncpa [#allocation4 + $0x1], 0  ;;  %s1038_s15 = smov 0   ;;  %s1040_s16 = smov 0  }
   0x6   :  { %s1042_s17 = smov 0   ;;  %s1044_s18 = smov 0  }
   0x7 LB: > { %s1059_s19 = sadd.s32 4294967295, %s1002_s18   ;;  %s655_s20 = sadd.s32 4294967294, %s1002_s18   ;;  %s1002_s18 = sphi %s1044_s18, %s1267_s18   ;;  %s998_s17 = sphi %s1042_s17, %s1266_s17   ;;  %s994_s16 = sphi %s1040_s16, %s1265_s16   ;;  %s990_s15 = sphi %s1038_s15, %s1264_s15  }
   0x8   : > { %p42_p0 = scmp.ne.s32.totalorder %s994_s16, %s990_s15  ;;  %p1245_p1 = scmp.eq.s32.totalorder %s1059_s19, 0 }
   0x9   : > { %p135_p3 = scmp.eq.s32.totalorder %s655_s20, 3  ;;  %p656_p5 = scmp.ge.s32.totalorder %s1002_s18, 1 }
   0xa   : > { %p1068_p4 = por %p1245_p1, %p42_p0  ;;  %p142_p7 = scmp.lt.s32.totalorder %s1002_s18, 5 }
   0xb   : > { %p1073_p6 = por %p135_p3, %p42_p0  ;;  %s1004_s24 = smov [#allocation5]  }
   0xc   : > { %s1249_s21 = scalar_select %p1068_p4, 1, 0 }
   0xd   : > { %s1250_s22 = scalar_select %p1073_p6, 1, 0 }
   0xe   : > { %p1078_p8 = pnand %p656_p5, %p142_p7  ;;  %s154_s25 = sshll.u32 %s1004_s24, 4  ;;  %s155_s25 = int_to_ptr.vmem [resolvable:$true] %s154_s25 }
   0xf   : > { %s1005_s27 = smov [#allocation7]   ;;  %s1006_s29 = smov [#allocation8]  }
  0x10   : > { %s1251_s23 = scalar_select %p1078_p8, 1, 0 }
  0x11   : > { %p749_p9 = pneg %p1078_p8  ;;  %s167_s28 = sshll.u32 %s1005_s27, 4  ;;  %s168_s28 = int_to_ptr.vmem [resolvable:$true] %s167_s28 }
  0x12   : > { %s180_s30 = sshll.u32 %s1006_s29, 4  ;;  %s835_s5 = scalar_lea.vmem %s155_s25, 256  ;;  %s181_s30 = int_to_ptr.vmem [resolvable:$true] %s180_s30 }
  0x13   : > { %p1086_p10 = pnand %p749_p9, %p1245_p1  ;;  %p836_p12 = scmp.ne.s32.totalorder %s155_s25, %s835_s5 }
  0x14   : > { %p843_p3 = scmp.lt.s32.totalorder %s155_s25, %s155_s25  ;;  %p844_p5 = scmp.lt.s32.totalorder %s835_s5, %s835_s5 }
  0x15   : > { %p826_p11 = pneg %p1086_p10 }
  0x16   : > { %p845_p7 = por %p844_p5, %p843_p3 }
  0x17   : > { %p838_p13 = pnand %p836_p12, %p826_p11 }
  0x19   : > { %p839_p0 = pneg %p838_p13 }
  0x1b   : > { %p846_p9 = pnand %p845_p7, %p839_p0 }
  0x1d   : > { %849 = shalt.err (!%p846_p9)
}
  0x1e   : > { %s1007_s6 = smov 64   ;;  %s1008_s7 = smov 4  }
  0x1f   : > { %752 = dma.hbm_to_vmem [thread:$0]  (!%p1086_p10), %s1241_s1, 256, %s155_s25, [#allocation6], %s1007_s6, %s1007_s6, %s1008_s7  }
  0x20   : > { %s861_s10 = scalar_lea.vmem %s168_s28, 256  ;;  %p869_p2 = scmp.lt.s32.totalorder %s168_s28, %s168_s28 }
  0x21   : > { %p862_p1 = scmp.ne.s32.totalorder %s168_s28, %s861_s10  ;;  %p870_p6 = scmp.lt.s32.totalorder %s861_s10, %s861_s10 }
  0x23   : > { %p864_p12 = pnand %p862_p1, %p826_p11  ;;  %p871_p3 = por %p870_p6, %p869_p2 }
  0x25   : > { %p865_p13 = pneg %p864_p12 }
  0x27   : > { %p872_p0 = pnand %p871_p3, %p865_p13 }
  0x29   : > { %875 = shalt.err (!%p872_p0)
}
  0x2a   : > { %755 = dma.hbm_to_vmem [thread:$0]  (!%p1086_p10), %s1242_s2, 256, %s168_s28, [#allocation6], %s1007_s6, %s1007_s6, %s1008_s7  }
  0x2b   : > { %s887_s13 = scalar_lea.vmem %s181_s30, 256  ;;  %p895_p9 = scmp.lt.s32.totalorder %s181_s30, %s181_s30 }
  0x2c   : > { %p888_p5 = scmp.ne.s32.totalorder %s181_s30, %s887_s13  ;;  %p896_p12 = scmp.lt.s32.totalorder %s887_s13, %s887_s13 }
  0x2e   : > { %p890_p7 = pnand %p888_p5, %p826_p11  ;;  %p897_p4 = por %p896_p12, %p895_p9 }
  0x30   : > { %p891_p1 = pneg %p890_p7 }
  0x32   : > { %p898_p2 = pnand %p897_p4, %p891_p1 }
  0x34   : > { %901 = shalt.err (!%p898_p2)
}
  0x35   : > { %758 = dma.hbm_to_vmem [thread:$0]  (!%p1086_p10), %s1243_s3, 256, %s181_s30, [#allocation9], %s1007_s6, %s1007_s6, %s1008_s7  }
  0x36   : > { %s1117_s24 = sadd.s32 1, %s1002_s18   ;;  %s29_s26 = sadd.s32 1, %s998_s17 }
  0x37   : > { %s26_s25 = ssub.s32 %s1002_s18, %s1117_s24  ;;  %p36_p6 = scmp.ne.s32.totalorder %s998_s17, %s994_s16 }
  0x38   : > { %p27_p4 = scmp.eq.s32.totalorder %s26_s25, 0  ;;  %p37_p11 = scmp.eq.s32.totalorder %s1002_s18, 0 }
  0x39   : > { %p770_p13 = scmp.lt.s32.totalorder %s1002_s18, 4  ;;  %p1253_p0 = scmp.eq.s32.totalorder %s1059_s19, 3 }
  0x3a   : > { %s1127_s27 = scalar_select %p27_p4, %s998_s17, %s29_s26  }
  0x3b   : > { %p38_p3 = por %p37_p11, %p36_p6  ;;  %p1131_p5 = por %p1253_p0, %p36_p6 }
  0x3c   : > { %s194_s29 = sand.u32 1, %s998_s17   ;;  %s662_s5 = sshll.u32 %s1002_s18, 6 }
  0x3d   : > { %s1254_s28 = scalar_select %p1131_p5, 1, 0 }
  0x3e   : > { %s661_s30 = sshll.u32 %s194_s29, 2  ;;  %s1140_s8 = scalar_lea.hbm %s1240_s0, %s662_s5 }
  0x3f   : > { %s198_s9 = scalar_lea.vmem [#allocation2], %s661_s30  ;;  %p1142_p10 = pnand %p770_p13, %p38_p3 }
  0x40   : > { %s205_s10 = sshll.u32 %s198_s9, 4  ;;  %s195_s12 = scalar_lea.sflag [#allocation3], %s194_s29  ;;  %s206_s10 = int_to_ptr.vmem [resolvable:$true] %s205_s10 }
  0x41   : > { %s902_s13 = scalar_lea.hbm %s1140_s8, 64  ;;  %p904_p1 = pneg %p1142_p10 }
  0x42   : > { %p903_p7 = scmp.ne.s32.totalorder %s1140_s8, %s902_s13  ;;  %s907_s25 = scalar_lea.hbm %s1240_s0, 256 }
  0x43   : > { %p908_p2 = scmp.lt.s32.totalorder %s1140_s8, %s1240_s0  ;;  %p909_p4 = scmp.lt.s32.totalorder %s907_s25, %s902_s13 }
  0x44   : > { %p905_p9 = pnand %p904_p1, %p903_p7 }
  0x45   : > { %p910_p6 = por %p909_p4, %p908_p2 }
  0x46   : > { %p906_p12 = pneg %p905_p9 }
  0x48   : > { %p911_p11 = pnand %p910_p6, %p906_p12 }
  0x4a   : > { %914 = shalt.err (!%p911_p11)
}
  0x4b   : > { %s915_s30 = scalar_lea.vmem %s206_s10, 64  ;;  %s1009_s29 = smov [#allocation2]  }
  0x4c   : > { %p916_p13 = scmp.ne.s32.totalorder %s206_s10, %s915_s30  ;;  %s920_s6 = sshll.u32 %s1009_s29, 4  ;;  %s921_s6 = int_to_ptr.vmem [resolvable:$false] %s920_s6 }
  0x4d   : > { %s922_s7 = scalar_lea.vmem %s921_s6, 128  ;;  %p923_p7 = scmp.lt.s32.totalorder %s206_s10, %s921_s6 }
  0x4e   : > { %p918_p3 = pnand %p916_p13, %p904_p1  ;;  %p924_p9 = scmp.lt.s32.totalorder %s922_s7, %s915_s30 }
  0x50   : > { %p919_p0 = pneg %p918_p3  ;;  %p925_p5 = por %p924_p9, %p923_p7 }
  0x52   : > { %p926_p8 = pnand %p925_p5, %p919_p0 }
  0x54   : > { %929 = shalt.err (!%p926_p8)
}
  0x55   : > { %762 = dma.hbm_to_vmem [thread:$0]  (!%p1142_p10), %s1140_s8, 64, %s206_s10, %s195_s12  }
  0x56   : > { %p1256_p12 = scmp.ne.s32.totalorder %s1251_s23, 0 }
  0x57   : > { %s1163_s9 = sand.u32 (!%p1256_p12), 1, %s994_s16   ;;  %p1257_p1 = scmp.ne.s32.totalorder (!%p1256_p12), %s1249_s21, 0 }
  0x58   : > { %214 = sbr.rel (%p1256_p12) target bundleno = 1030 (0x406), region = 36  ;;  %s664_s13 = sshll.u32 (!%p1256_p12), %s1163_s9, 2 }
  0x59   : > { %s217_s14 = scalar_lea.sflag (!%p1256_p12), [#allocation3], %s1163_s9  ;;  %s220_s20 = scalar_lea.vmem (!%p1256_p12), [#allocation2], %s664_s13 }
  0x5d   : > { %973 = dma.done.wait (%p1257_p1), %s217_s14, 64  }
  0x5e   : > { %975 = vsyncadd (%p1257_p1), %s217_s14, 4294967232  ;;  %p1258_p8 = scmp.eq.s32.totalorder %s1059_s19, 0 }
  0x60   : > { %977 = dma.done.wait (%p1258_p8), [#allocation6], 512   ;;  %p1259_p5 = pmov %p1258_p8 }
  0x62   : > { %979 = vsyncadd (%p1259_p5), [#allocation6], 4294966784  ;;  %p1260_p10 = pmov %p1259_p5 }
  0x63   : > { %p1261_p2 = pmov %p1259_p5 }
  0x64   : > { %981 = dma.done.wait (%p1260_p10), [#allocation9], 256  }
  0x65   : > { %983 = vsyncadd (%p1261_p2), [#allocation9], 4294967040  ;;  %v1010_v0 = vmov 0.0   ;;  %vm1011_vm0 = vmmov 0   ;;  %v814_v1 = vld [vmem:[#allocation7 + $0x8] sm:$0xff]   ;;  %v815_v2 = vld [vmem:[#allocation5 + $0x8] sm:$0xff]  }
  0x66   : > { %705 = vmatprep.subr.bf16.mxu1 %v1010_v0  ;;  %697 = vmatprep.subr.bf16.mxu0 %v1010_v0  ;;  %v816_v3 = vld [vmem:[#allocation7] sm:$0xff]   ;;  %v817_v4 = vld [vmem:[#allocation5] sm:$0xff]   ;;  %v258_v5 = vld [vmem:[%s220_s20] sm:$0xf]  ;;  %vm275_vm1 = vcmask 261120   ;;  %vm480_vm2 = vcmask 64512  }
  0x67   : > { %709 = vmatprep.mubr.msk.bf16.mxu1 %vm1011_vm0, %v1010_v0  ;;  %701 = vmatprep.mubr.msk.bf16.mxu0 %vm1011_vm0, %v1010_v0  ;;  %v818_v18 = vld [vmem:[#allocation8 + $0x8] sm:$0xff]   ;;  %v819_v19 = vld [vmem:[#allocation8] sm:$0xff]   ;;  %vm497_vm3 = vcmask 1043456   ;;  %s668_s21 = sshll.u32 %s1163_s9, 3  ;;  %s681_s23 = sshll.u32 %s1059_s19, 7 }
  0x68   : > { %706 = vmatpush3.bf16.msra.mxu1 %v814_v1  ;;  %698 = vmatpush3.bf16.msra.mxu0 %v815_v2  ;;  %s256_s8 = scalar_lea.vmem [#allocation10], %s668_s21  ;;  %s1197_s25 = scalar_lea.hbm %s1244_s4, %s681_s23 }
  0x69   : > { %707 = vmatprep.subr.bf16.mxu1 %v1010_v0  ;;  %699 = vmatprep.subr.bf16.mxu0 %v1010_v0  ;;  %s556_s10 = sshll.u32 %s256_s8, 4  ;;  %s543_s26 = scalar_lea.sflag [#allocation4], %s1163_s9  ;;  %s1199_s10 = int_to_ptr.vmem [resolvable:$true] %s556_s10 }
  0x6a   : > { %s930_s5 = scalar_lea.vmem %s1199_s10, 128  ;;  %p1262_p6 = scmp.ne.s32.totalorder %s1254_s28, 0 }
  0x6b   : > { %p931_p4 = scmp.ne.s32.totalorder %s1199_s10, %s930_s5  ;;  %s1012_s19 = smov [#allocation10]  }
  0x6c   : > { %708 = vmatpush3.bf16.msra.mxu1 %v816_v3  ;;  %700 = vmatpush3.bf16.msra.mxu0 %v817_v4  ;;  %s934_s30 = sshll.u32 %s1012_s19, 4  ;;  %s935_s30 = int_to_ptr.vmem [resolvable:$false] %s934_s30 }
  0x6d   : > { %721 = vmatprep.subr.bf16.mxu1 %v1010_v0  ;;  %713 = vmatprep.subr.bf16.mxu0 %v1010_v0  ;;  %p932_p11 = pnand %p931_p4, %p1262_p6  ;;  %s936_s29 = scalar_lea.vmem %s935_s30, 256 }
  0x6e   : > { %p937_p3 = scmp.lt.s32.totalorder %s1199_s10, %s935_s30  ;;  %p938_p0 = scmp.lt.s32.totalorder %s936_s29, %s930_s5 }
  0x6f   : > { %710 = vmatmul.mubr.msk.bf16.vlgmr.msra.gmra.mxu1 %vm275_vm1, %v258_v5  ;;  %702 = vmatmul.mubr.msk.bf16.vlgmr.msra.gmra.mxu0 %vm275_vm1, %v258_v5  ;;  %p933_p13 = pneg %p932_p11 }
  0x70   : > { %723 = vmatprep.mubr.msk.bf16.mxu1 %vm1011_vm0, %v1010_v0  ;;  %717 = vmatprep.mubr.msk.bf16.mxu0 %vm1011_vm0, %v1010_v0  ;;  %p939_p7 = por %p938_p0, %p937_p3 }
  0x71   : > { %714 = vmatpush3.bf16.msra.mxu0 %v818_v18 }
  0x72   : > { %715 = vmatprep.subr.bf16.mxu0 %v1010_v0  ;;  %p940_p9 = pnand %p939_p7, %p933_p13 }
  0x75   : > { %716 = vmatpush3.bf16.msra.mxu0 %v819_v19 }
  0x76   : > { %727 = vmatprep.subr.bf16.mxu0 %v1010_v0 }
  0x78   : > { %718 = vmatmul.mubr.msk.bf16.vlgmr.msra.gmra.mxu0 %vm275_vm1, %v258_v5 }
  0x79   : > { %729 = vmatprep.mubr.msk.bf16.mxu0 %vm1011_vm0, %v1010_v0 }
 0x12f   : > { %v369_v6 = vpop.f32.mrf.mxu1  ;;  %v313_v8 = vpop.f32.mrf.mxu0 }
 0x130   : > { %v433_v7 = vpack.c.bf16 %v369_v6, %v369_v6  ;;  %v431_v11 = vmul.f32 0.17677669, %v313_v8 }
 0x131   : > { %v711_v9 = vpop.f32.mrf.mxu1  ;;  %v703_v12 = vpop.f32.mrf.mxu0 }
 0x132   : > { %v438_v10 = vsel %vm275_vm1, %v433_v7, 0  ;;  %v432_v16 = vpack.c.bf16 %v431_v11, %v431_v11 }
 0x133   : > { %v372_v13 = vpop.f32.mrf.mxu1  ;;  %722 = vmatpush3.bf16.xpose.msra.mxu1 %v438_v10  ;;  %v316_v14 = vpop.f32.mrf.mxu0 }
 0x135   : > { %v712_v15 = vpop.f32.mrf.mxu1  ;;  %v704_v17 = vpop.f32.mrf.mxu0 }
 0x138   : > { %v425_v30 = vpop.f32.mrf.mxu0 }
 0x139   : > { %v493_v31 = vpack.c.bf16 %v425_v30, %v425_v30 }
 0x13a   : > { %724 = vmatmul.mubr.msk.bf16.vlgmr.msra.gmra.mxu1 %vm275_vm1, %v432_v16  ;;  %v719_v32 = vpop.f32.mrf.mxu0 }
 0x13b   : > { %v499_v33 = vsel %vm497_vm3, %v493_v31, 0 }
 0x13c   : > { %v428_v34 = vpop.f32.mrf.mxu0  ;;  %728 = vmatpush3.bf16.msra.mxu0 %v499_v33 }
 0x13e   : > { %v720_v35 = vpop.f32.mrf.mxu0 }
 0x1fa   : > { %v474_v20 = vpop.f32.mrf.mxu1 }
 0x1fb   : > { %v481_v21 = vsel %vm480_vm2, %v474_v20, -inf }
 0x1fc   : > { %482 = vmax.xlane.f32.xlu0 %v481_v21  ;;  %v725_v22 = vpop.f32.mrf.mxu1 }
 0x1fe   : > { %v477_v23 = vpop.f32.mrf.mxu1 }
 0x200   : > { %v726_v24 = vpop.f32.mrf.mxu1 }
 0x285   : > { %v483_v25 = vpop.xlane.xlu0 %482 }
 0x286   : > { %v484_v26 = vsub.f32 %v474_v20, %v483_v25 }
 0x288   : > { %v485_v27 = vmul.f32 1.442695, %v484_v26 }
 0x28a   : > { %820 = vpow2.f32 %v485_v27 }
 0x297   : > { %v821_v28 = vpop.eup %820 }
 0x298   : > { %v487_v29 = vsel %vm480_vm2, %v821_v28, 0.0 }
 0x299   : > { %488 = vadd.xlane.f32.xlu0 %v487_v29 }
 0x322   : > { %v489_v36 = vpop.xlane.xlu0 %488 }
 0x323   : > { %822 = vrcp.f32 %v489_v36 }
 0x330   : > { %v823_v37 = vpop.eup %822 }
 0x331   : > { %v491_v38 = vmul.f32 %v823_v37, %v821_v28 }
 0x333   : > { %v492_v39 = vpack.c.bf16 %v491_v38, %v491_v38 }
 0x335   : > { %730 = vmatmul.mubr.msk.bf16.vlgmr.msra.gmra.mxu0 %vm480_vm2, %v492_v39 }
 0x3f5   : > { %v535_v40 = vpop.f32.mrf.mxu0 }
 0x3f6   : > { %541 = vst.msk [vmem:[%s256_s8] sm:$0xff] %vm275_vm1, %v535_v40 }
 0x3f7   : > { %v731_v41 = vpop.f32.mrf.mxu0 }
 0x3f8   : > { %943 = shalt.err (!%p940_p9)
}
 0x3f9   : > { %s944_s6 = scalar_lea.hbm %s1197_s25, 128  ;;  %s948_s13 = scalar_lea.hbm %s1244_s4, 512 }
 0x3fa   : > { %p945_p12 = scmp.ne.s32.totalorder %s1197_s25, %s944_s6  ;;  %p949_p5 = scmp.lt.s32.totalorder %s1197_s25, %s1244_s4 }
 0x3fb   : > { %p950_p10 = scmp.lt.s32.totalorder %s948_s13, %s944_s6 }
 0x3fc   : > { %p946_p1 = pnand %p945_p12, %p1262_p6 }
 0x3fd   : > { %p951_p2 = por %p950_p10, %p949_p5 }
 0x3fe   : > { %p947_p8 = pneg %p946_p1 }
 0x400   : > { %p952_p4 = pnand %p951_p2, %p947_p8 }
 0x402   : > { %955 = shalt.err (!%p952_p4)
}
 0x403   : > { %747 = dma.vmem_to_hbm [thread:$0]  (%p1262_p6), %s1199_s10, 128, %s1197_s25, %s543_s26   ;;  %v538_v42 = vpop.f32.mrf.mxu0 }
 0x405   : > { %v732_v43 = vpop.f32.mrf.mxu0 }
 0x406 PF: > { %p774_p11 = scmp.ge.s32.totalorder %s1002_s18, 2  ;;  %s568_s21 = sand.u32 1, %s990_s15  }
 0x407   : > { %p1263_p13 = scmp.ne.s32.totalorder %s1250_s22, 0  ;;  %s569_s23 = scalar_lea.sflag [#allocation4], %s568_s21 }
 0x409   : > { %p764_p3 = pnand %p774_p11, %p1263_p13 }
 0x40b   : > { %p765_p0 = pneg %p764_p3 }
 0x40d   : > { %985 = dma.done.wait (%p765_p0), %s569_s23, 128  }
 0x40e   : > { %987 = vsyncadd (%p765_p0), %s569_s23, 4294967168  ;;  %p19_p6 = scmp.ge.s32.totalorder %s1117_s24, 6   ;;  %s1264_s15 = smov %s994_s16 }
 0x40f   : > { %s1265_s16 = smov %s998_s17  ;;  %s1266_s17 = smov %s1127_s27 }
 0x410   : > { %s1267_s18 = smov %s1117_s24  ;;  %21 = sbr.rel (!%p19_p6) target bundleno = 7 (0x7), region = 93 }
 0x415   :  { %574 = vsyncpa [#allocation3], 1 }
 0x416   :  { %576 = vsyncpa [#allocation3 + $0x1], 1 }
 0x417   :  { %577 = vsyncpa [#allocation6], 1 }
 0x418   :  { %578 = vsyncpa [#allocation9], 1 }
 0x419   :  { %579 = vsyncpa [#allocation4], 1 }
 0x41a   :  { %581 = vsyncpa [#allocation4 + $0x1], 1 }

</bundles_post_ra>
